<compile_context>
chip_gen: v6e
topology: v6e:2x2x1
jax: 0.10.0
libtpu: 0.0.40
codegen_flags: <defaults>
</compile_context>

<pallas_src>
import numpy as np
import jax
import jax.numpy as jnp
from jax import lax
from jax.experimental import pallas as pl
from jax.experimental.pallas import tpu as pltpu


# ----------------------------- config (mirrors M.*) -----------------------------
class M:
    n_pts0 = 8
    n_pts1 = 4
    dim_loi = 32
    dim_fc = 64
    n_dyn_junc = 16
    eval_junc_thres = 0.008
    use_conv = False                       # MLP head branch
    loss_weight = {"lpos": 1.0, "lneg": 1.0}


FEATURE_DIM = 0
SCALE = M.n_pts0 // M.n_pts1               # MaxPool1d kernel == stride


# ----------------------------- Pallas kernel 1: fc1 (1x1 conv) -----------------------------
def _fc1_kernel(x_ref, w_ref, b_ref, o_ref):
    # x_ref: (tm, Cin) bf16   w_ref: (Cin, Cout) bf16   b_ref: (1, Cout) f32
    acc = jnp.dot(x_ref[...], w_ref[...], preferred_element_type=jnp.float32)
    o_ref[...] = acc + b_ref[...]          # bias/epilogue stays f32 (v5e has no bf16 VPU)


def fc1_pallas(x_flat, w, b, tm=2048):
    """x_flat: (Mrows, Cin) bf16; w: (Cin, Cout) bf16; b: (1, Cout) f32 -> (Mrows, Cout) f32."""
    Mrows, Cin = x_flat.shape
    Cout = w.shape[1]
    # Large streaming tiles (mem-bound kernel), but keep >=2 grid steps so both
    # v7x TensorCores get work under dimension_semantics=("parallel",).
    tm = min(tm, max(8, (((Mrows + 1) // 2) + 7) // 8 * 8))
    M_pad = pl.cdiv(Mrows, tm) * tm
    if M_pad != Mrows:
        x_flat = jnp.pad(x_flat, ((0, M_pad - Mrows), (0, 0)))
    out = pl.pallas_call(
        _fc1_kernel,
        out_shape=jax.ShapeDtypeStruct((M_pad, Cout), jnp.float32),
        grid=(M_pad // tm,),
        in_specs=[
            pl.BlockSpec((tm, Cin), lambda i: (i, 0)),
            pl.BlockSpec((Cin, Cout), lambda i: (0, 0)),   # weights resident
            pl.BlockSpec((1, Cout), lambda i: (0, 0)),
        ],
        out_specs=pl.BlockSpec((tm, Cout), lambda i: (i, 0)),
        compiler_params=pltpu.CompilerParams(dimension_semantics=("parallel",)),
    )(x_flat, w, b)
    return out[:Mrows]


# ---------------- Pallas kernel 2: MaxPool1d + fc2 MLP + BCEWithLogits loss ----------------
def _pool_fc2_kernel(xp_ref, y_ref, w1_ref, b1_ref, w2_ref, b2_ref, w3_ref, b3_ref,
                     logit_ref, loss_ref):
    v = xp_ref[...]                                   # (SCALE, tl, dim_loi*n_pts1)
    flat = jnp.max(v, axis=0)                         # MaxPool1d: VPU max of lane-dense slabs
    h = jnp.maximum(
        jnp.dot(flat, w1_ref[...], preferred_element_type=jnp.float32) + b1_ref[...], 0.0)
    h = jnp.maximum(
        jnp.dot(h, w2_ref[...], preferred_element_type=jnp.float32) + b2_ref[...], 0.0)
    # final Linear(dim_fc -> 1): contract dfc of w3 (1,dfc) against dfc of h (tl,dfc)
    # -> (1, tl) lane-dense logits row directly (no sublane->lane relayout, no masked store)
    z = lax.dot_general(w3_ref[...], h, (((1,), (1,)), ((), ())),
                        preferred_element_type=jnp.float32) + b3_ref[...]   # (1, tl)
    tl = z.shape[1]
    zl = z.reshape(1, 1, tl)
    y = y_ref[...]                                    # (1, 1, tl)
    logit_ref[...] = zl
    # BCEWithLogitsLoss(reduction='none'), numerically stable form (f32)
    loss_ref[...] = jnp.maximum(zl, 0.0) - zl * y + jnp.log1p(jnp.exp(-jnp.abs(zl)))


def pool_fc2_loss_pallas(xp_pairs, y3, w1, b1, w2, b2, w3, b3, tl=256):
    """xp_pairs: (SCALE, Lp, Din); y3: (Lp//tl, 1, tl) -> logits/loss (Lp//tl, 1, tl)."""
    S, Lp, Din = xp_pairs.shape
    assert Lp % tl == 0
    n_tiles = Lp // tl
    dfc = w1.shape[1]
    return pl.pallas_call(
        _pool_fc2_kernel,
        out_shape=(
            jax.ShapeDtypeStruct((n_tiles, 1, tl), jnp.float32),
            jax.ShapeDtypeStruct((n_tiles, 1, tl), jnp.float32),
        ),
        grid=(n_tiles,),
        in_specs=[
            pl.BlockSpec((S, tl, Din), lambda i: (0, i, 0)),   # SCALE-leading, lane-dense
            pl.BlockSpec((1, 1, tl), lambda i: (i, 0, 0)),
            pl.BlockSpec((Din, dfc), lambda i: (0, 0)),
            pl.BlockSpec((1, dfc), lambda i: (0, 0)),
            pl.BlockSpec((dfc, dfc), lambda i: (0, 0)),
            pl.BlockSpec((1, dfc), lambda i: (0, 0)),
            pl.BlockSpec((1, dfc), lambda i: (0, 0)),
            pl.BlockSpec((1, 1), lambda i: (0, 0)),
        ],
        out_specs=(
            pl.BlockSpec((1, 1, tl), lambda i: (i, 0, 0)),
            pl.BlockSpec((1, 1, tl), lambda i: (i, 0, 0)),
        ),
        compiler_params=pltpu.CompilerParams(dimension_semantics=("parallel",)),
    )(xp_pairs, y3, w1, b1, w2, b2, w3, b3)


# ----------------------------- JAX glue (sampling, gather) -----------------------------
def non_maximum_suppression(a):
    # a: (n_type, H, W) ; 3x3 max pool, stride 1, SAME padding (matches F.max_pool2d(3,1,1))
    ap = lax.reduce_window(a, -jnp.inf, lax.max, (1, 3, 3), (1, 1, 1), "SAME")
    mask = (a == ap).astype(a.dtype)
    return a * mask


def sample_lines_eval(jmap_i, joff_i, junc_i, jtyp_i, Lpos_i, K):
    """Eval-mode sample_lines with a static K (pairs selected by u<v => static count)."""
    n_type, H, W = jmap_i.shape
    N = junc_i.shape[0]
    jm = non_maximum_suppression(jmap_i).reshape(n_type, -1)
    jo = joff_i.reshape(n_type, 2, -1)
    score, index = lax.top_k(jm, K)                                        # (n_type, K)
    # original hard-codes 128 (feature map side); parametrized to W here
    yy = (index // W).astype(jnp.float32) + jnp.take_along_axis(jo[:, 0], index, axis=1) + 0.5
    xx = (index % W).astype(jnp.float32) + jnp.take_along_axis(jo[:, 1], index, axis=1) + 0.5
    xy = jnp.stack([yy, xx], axis=-1)                                      # (n_type, K, 2)
    dist = jnp.sum((xy[:, :, None, :] - junc_i[None, None]) ** 2, axis=-1)  # (n_type,K,N)
    cost = jnp.min(dist, axis=-1)
    match = jnp.argmin(dist, axis=-1)
    type_ok = jtyp_i[match] == jnp.arange(n_type)[:, None]
    match = jnp.where(type_ok, match, N)
    match = jnp.where(cost > 1.5 * 1.5, N, match)
    match = match.reshape(-1)                                              # (n_type*K,)
    nK = n_type * K
    u_np, v_np = np.meshgrid(np.arange(nK), np.arange(nK), indexing="ij")
    keep = (u_np < v_np).ravel()                                           # static eval-mode mask
    u_sel = u_np.ravel()[keep]
    v_sel = v_np.ravel()[keep]
    label = Lpos_i[match[u_sel], match[v_sel]].astype(jnp.float32)
    xy_flat = xy.reshape(nK, 2)
    line = jnp.stack([xy_flat[u_sel], xy_flat[v_sel]], axis=1)             # (pairs, 2, 2)
    return line, label


def bilinear_sample_pooled(x_hwc, lines, lam_sq):
    """Bilinear sample line points, emitting the pool_fc2 kernel layout directly:
    (SCALE, n_lines, n_pts1*dim_loi) — no big reshape/transpose after the gather."""
    # TODO(synk): move this gather into a scalar-prefetch Pallas kernel (fused with fc1/fc2)
    # for production sizes; kept as an XLA gather here.
    H, W, C = x_hwc.shape
    S, Q = lam_sq.shape
    Lrows = lines.shape[0]
    wgt = lam_sq[:, None, :, None]                                         # (S, 1, Q, 1)
    p = (lines[None, :, 0, None, :] * wgt
         + lines[None, :, 1, None, :] * (1.0 - wgt) - 0.5)                 # (S, L, Q, 2)
    p = p.reshape(-1, 2)
    px, py = p[:, 0], p[:, 1]
    # original clamps to [0,127] (128x128 feature map); parametrized to H-1 / W-1
    px0 = jnp.clip(jnp.floor(px), 0, H - 1)
    py0 = jnp.clip(jnp.floor(py), 0, W - 1)
    px1 = jnp.clip(px0 + 1, 0, H - 1)
    py1 = jnp.clip(py0 + 1, 0, W - 1)
    px0l, py0l = px0.astype(jnp.int32), py0.astype(jnp.int32)
    px1l, py1l = px1.astype(jnp.int32), py1.astype(jnp.int32)
    g = lambda a, b: x_hwc[a, b, :]                                        # (P, C) gathers
    xp = (g(px0l, py0l) * ((px1 - px) * (py1 - py))[:, None]
          + g(px1l, py0l) * ((px - px0) * (py1 - py))[:, None]
          + g(px0l, py1l) * ((px1 - px) * (py - py0))[:, None]
          + g(px1l, py1l) * ((px - px0) * (py - py0))[:, None])            # (S*L*Q, C)
    return xp.reshape(S, Lrows, Q * C)                                     # lane flatten = (q, c)


# ----------------------------- forward -----------------------------
def line_vectorizer_forward(feature, jmap, joff, junc, jtyp, Lpos, params):
    # TODO(synk): backbone is an external module; feature / jmap / joff are taken as inputs.
    B, Cin, H, W = feature.shape

    # fc1: 1x1 conv as a Pallas tiled matmul.  The NCHW->rows relayout and the bf16
    # cast fuse into one XLA pass, so the kernel streams half the activation bytes.
    x_flat = feature.transpose(0, 2, 3, 1).reshape(B * H * W, Cin).astype(jnp.bfloat16)
    w_fc1 = params["w_fc1"].astype(jnp.bfloat16)
    x_fc1 = fc1_pallas(x_flat, w_fc1, params["b_fc1"])                     # (B*H*W, dim_loi) f32
    x_nhwc = x_fc1.reshape(B, H, W, M.dim_loi)

    n_type = jmap.shape[1]
    # TODO(synk): eval-mode K is data dependent (count of jmap > thres); forced static K = max_K.
    K = max(2, M.n_dyn_junc // n_type)

    # junction sampling + line proposals, vmapped over the batch (no Python loop)
    lines_b, labels_b = jax.vmap(
        lambda jm, jo, jc, jt, lp: sample_lines_eval(jm, jo, jc, jt, lp, K)
    )(jmap, joff, junc, jtyp, Lpos)                    # (B, pairs, 2, 2), (B, pairs)
    pairs = lines_b.shape[1]
    L = B * pairs

    # bilinear gather directly in pooled layout; out_axes=1 keeps SCALE leading so the
    # concat over batch is a free reshape, not a transpose of the big tensor.
    lam = jnp.linspace(0.0, 1.0, M.n_pts0)
    lam_sq = lam.reshape(M.n_pts1, SCALE).T            # (SCALE, n_pts1): lam_sq[s,q]=lam[q*S+s]
    xp_b = jax.vmap(lambda xh, ln: bilinear_sample_pooled(xh, ln, lam_sq),
                    in_axes=(0, 0), out_axes=1)(x_nhwc, lines_b)
    Din = M.dim_loi * M.n_pts1 + FEATURE_DIM
    xp_pairs = xp_b.reshape(SCALE, L, Din)
    y = labels_b.reshape(L)

    # Permute fc2's first-layer weight rows once (tiny, 128x64) so its input index order
    # (torch flatten: c*n_pts1+q) matches the gather layout (q*dim_loi+c).
    w1p = (params["w1"].reshape(M.dim_loi, M.n_pts1, M.dim_fc)
                        .transpose(1, 0, 2)
                        .reshape(M.n_pts1 * M.dim_loi, M.dim_fc))

    TL = 256                                           # fills 256-wide v6e/v7x MXU; fine on v5e
    n_tiles = pl.cdiv(L, TL)
    Lp = n_tiles * TL
    xp_pad = jnp.pad(xp_pairs, ((0, 0), (0, Lp - L), (0, 0)))
    y_pad = jnp.pad(y, (0, Lp - L)).reshape(n_tiles, 1, TL)

    logits_t, loss_t = pool_fc2_loss_pallas(
        xp_pad, y_pad, w1p, params["b1"], params["w2"], params["b2"],
        params["w3"], params["b3"], tl=TL)
    logits = logits_t.reshape(Lp)[:L]
    loss = loss_t.reshape(Lp)[:L]
    score = jax.nn.sigmoid(logits)

    # sum_batch / normalized positive & negative losses (equal line count per image)
    loss_b = loss.reshape(B, pairs)
    y_b = y.reshape(B, pairs)
    lpos = jnp.sum(loss_b * y_b, axis=1) / jnp.maximum(jnp.sum(y_b, axis=1), 1.0)
    lneg = jnp.sum(loss_b * (1.0 - y_b), axis=1) / jnp.maximum(jnp.sum(1.0 - y_b, axis=1), 1.0)

    # TODO(synk): inference-time line/junction selection (sigmoid>0.5 mask, argsort,
    # modular repeat to n_out_line / n_out_junc) is dynamically shaped; not implemented.
    return {
        "logits": logits,
        "score": score,
        "lines": lines_b,
        "labels": y,
        "lpos": lpos * M.loss_weight["lpos"],
        "lneg": lneg * M.loss_weight["lneg"],
    }


# ----------------------------- main -----------------------------
if __name__ == "__main__":
    key = jax.random.PRNGKey(0)
    ks = jax.random.split(key, 12)

    B, Cin, H, W = 2, 256, 16, 16
    n_type, N_junc = 2, 6

    # synthetic "backbone" outputs + meta
    feature = jax.random.normal(ks[0], (B, Cin, H, W), jnp.float32)
    jmap = jax.random.uniform(ks[1], (B, n_type, H, W), jnp.float32)
    joff = jax.random.uniform(ks[2], (B, n_type, 2, H, W), jnp.float32) - 0.5
    junc = jax.random.uniform(ks[3], (B, N_junc, 2), jnp.float32) * H
    jtyp = jax.random.randint(ks[4], (B, N_junc), 0, n_type)
    Lpos = (jax.random.uniform(ks[5], (B, N_junc + 1, N_junc + 1)) > 0.5).astype(jnp.int32)

    # deterministic parameter init (Conv2d(256,dim_loi,1) ; Linear stack of fc2)
    D_in = M.dim_loi * M.n_pts1 + FEATURE_DIM
    params = {
        "w_fc1": jax.random.normal(ks[6], (Cin, M.dim_loi), jnp.float32) * 0.05,
        "b_fc1": jnp.zeros((1, M.dim_loi), jnp.float32),
        "w1": jax.random.normal(ks[7], (D_in, M.dim_fc), jnp.float32) * 0.05,
        "b1": jnp.zeros((1, M.dim_fc), jnp.float32),
        "w2": jax.random.normal(ks[8], (M.dim_fc, M.dim_fc), jnp.float32) * 0.05,
        "b2": jnp.zeros((1, M.dim_fc), jnp.float32),
        "w3": jax.random.normal(ks[9], (1, M.dim_fc), jnp.float32) * 0.05,
        "b3": jnp.zeros((1, 1), jnp.float32),
    }

    out = line_vectorizer_forward(feature, jmap, joff, junc, jtyp, Lpos, params)
    jax.block_until_ready(out)
    print("KERNEL_OK")
</pallas_src>

<mosaic_0001>
module attributes {stable_mosaic.version = 11 : i64} {
  func.func @_fc1_kernel(%arg0: i32, %arg1: memref<256x256xbf16, #tpu.memory_space<vmem>>, %arg2: memref<256x32xbf16, #tpu.memory_space<vmem>>, %arg3: memref<1x32xf32, #tpu.memory_space<vmem>>, %arg4: memref<256x32xf32, #tpu.memory_space<vmem>>) attributes {dimension_semantics = [#tpu.dimension_semantics<parallel>], iteration_bounds = array<i64: 2>, scalar_prefetch = 0 : i64, scratch_operands = 0 : i64, tpu.core_type = #tpu.core_type<tc>, window_params = [{transform_indices = @transform_0, window_bounds = array<i64: 256, 256>}, {pipeline_mode = #tpu.pipeline_mode<synchronous>, transform_indices = @transform_1, window_bounds = array<i64: 256, 32>}, {pipeline_mode = #tpu.pipeline_mode<synchronous>, transform_indices = @transform_2, window_bounds = array<i64: 1, 32>}, {transform_indices = @transform_3, window_bounds = array<i64: 256, 32>}]} {
    %c0 = arith.constant 0 : index
    %c0_0 = arith.constant 0 : index
    %0 = vector.load %arg1[%c0, %c0_0] : memref<256x256xbf16, #tpu.memory_space<vmem>>, vector<256x256xbf16>
    %c0_1 = arith.constant 0 : index
    %c0_2 = arith.constant 0 : index
    %1 = vector.load %arg2[%c0_1, %c0_2] : memref<256x32xbf16, #tpu.memory_space<vmem>>, vector<256x32xbf16>
    %cst = arith.constant dense<0.000000e+00> : vector<256x32xf32>
    %2 = tpu.matmul %0, %1, %cst {dimension_numbers = #tpu.dot_dimension_numbers<[1], [0], [0], [1], [0, 0, 1, 1], [], []>} : vector<256x256xbf16>, vector<256x32xbf16>, vector<256x32xf32> -> vector<256x32xf32>
    %c0_3 = arith.constant 0 : index
    %c0_4 = arith.constant 0 : index
    %3 = vector.load %arg3[%c0_3, %c0_4] : memref<1x32xf32, #tpu.memory_space<vmem>>, vector<1x32xf32>
    %4 = vector.broadcast %3 : vector<1x32xf32> to vector<256x32xf32>
    %5 = arith.addf %2, %4 : vector<256x32xf32>
    %c0_5 = arith.constant 0 : index
    %c0_6 = arith.constant 0 : index
    %6 = vector.load %arg4[%c0_5, %c0_6] : memref<256x32xf32, #tpu.memory_space<vmem>>, vector<256x32xf32>
    tpu.vector_store %arg4[%c0_5, %c0_6], %5 {strides = array<i32>} : memref<256x32xf32, #tpu.memory_space<vmem>>, vector<256x32xf32>,
    return
  }
  func.func @transform_0(%arg0: i32) -> (i32, i32) {
    %c0_i32 = arith.constant 0 : i32
    %c0_i32_0 = arith.constant 0 : i32
    return %arg0, %c0_i32 : i32, i32
  }
  func.func @transform_1(%arg0: i32) -> (i32, i32) {
    %c0_i32 = arith.constant 0 : i32
    %c0_i32_0 = arith.constant 0 : i32
    %c0_i32_1 = arith.constant 0 : i32
    return %c0_i32, %c0_i32_0 : i32, i32
  }
  func.func @transform_2(%arg0: i32) -> (i32, i32) {
    %c0_i32 = arith.constant 0 : i32
    %c0_i32_0 = arith.constant 0 : i32
    %c0_i32_1 = arith.constant 0 : i32
    return %c0_i32, %c0_i32_0 : i32, i32
  }
  func.func @transform_3(%arg0: i32) -> (i32, i32) {
    %c0_i32 = arith.constant 0 : i32
    %c0_i32_0 = arith.constant 0 : i32
    return %arg0, %c0_i32 : i32, i32
  }
}

</mosaic_0001>

<bundles_post_ra>
// kernel: tpu_custom_call.1
= control target key start
LH: loop header
LB: loop body
LE: loop exit
PB: predicated region body
PF: predicated region fallthrough
CT: control target
= control target key end

     0   :  { %8 = vsyncpa [#allocation3], 0  ;;  %s1453_s0 = inlined_call_operand.hbm [shape: bf16[512,256], index: 0, kind: input, shape index: {}]   ;;  %s1454_s1 = inlined_call_operand.vmem [shape: bf16[256,32], index: 1, kind: input, shape index: {}]   ;;  %s1455_s2 = inlined_call_operand.vmem [shape: f32[1,32], index: 2, kind: input, shape index: {}]   ;;  %s1456_s3 = inlined_call_operand.vmem [shape: f32[512,32], index: 3, kind: output, shape index: {}]  }
   0x1   :  { %10 = vsyncpa [#allocation3 + $0x1], 0  ;;  %s1168_s12 = smov 0   ;;  %s1170_s13 = smov 0  }
   0x2   :  { %s1172_s14 = smov 0   ;;  %s1174_s15 = smov 0  }
   0x3 LB: > { %s783_s16 = sadd.s32 4294967295, %s1143_s15   ;;  %s1188_s17 = sadd.s32 1, %s1143_s15   ;;  %s1143_s15 = sphi %s1174_s15, %s1465_s15   ;;  %s1139_s14 = sphi %s1172_s14, %s1464_s14   ;;  %s1135_s13 = sphi %s1170_s13, %s1463_s13   ;;  %s1131_s12 = sphi %s1168_s12, %s1462_s12  }
   0x4   : > { %s20_s18 = ssub.s32 %s1143_s15, %s1188_s17  ;;  %s23_s19 = sadd.s32 1, %s1139_s14 }
   0x5   : > { %p21_p0 = scmp.eq.s32.totalorder %s20_s18, 0  ;;  %p30_p1 = scmp.ne.s32.totalorder %s1139_s14, %s1135_s13 }
   0x6   : > { %p31_p2 = scmp.eq.s32.totalorder %s1143_s15, 0  ;;  %p36_p3 = scmp.ne.s32.totalorder %s1135_s13, %s1131_s12 }
   0x7   : > { %s1198_s20 = scalar_select %p21_p0, %s1139_s14, %s23_s19  }
   0x8   : > { %p32_p4 = por %p31_p2, %p30_p1  ;;  %p37_p5 = scmp.eq.s32.totalorder %s783_s16, 0 }
   0x9   : > { %p982_p6 = scmp.lt.s32.totalorder %s1143_s15, 2  ;;  %s134_s22 = sand.u32 1, %s1139_s14  }
   0xa   : > { %p1203_p7 = por %p37_p5, %p36_p3  ;;  %s787_s23 = sshll.u32 %s134_s22, 8 }
   0xb   : > { %s847_s24 = sshll.u32 %s1143_s15, 12  ;;  %s138_s28 = scalar_lea.vmem [#allocation2], %s787_s23 }
   0xc   : > { %s1458_s21 = scalar_select %p1203_p7, 1, 0 }
   0xd   : > { %s1212_s27 = scalar_lea.hbm %s1453_s0, %s847_s24  ;;  %s146_s29 = sshll.u32 %s138_s28, 4  ;;  %s1214_s29 = int_to_ptr.vmem [resolvable:$true] %s146_s29 }
   0xe   : > { %p1216_p8 = pnand %p982_p6, %p32_p4  ;;  %s1221_s4 = scalar_lea.sflag [#allocation3], %s134_s22 }
   0xf   : > { %s1081_s5 = scalar_lea.hbm %s1212_s27, 4096  ;;  %s1086_s8 = scalar_lea.hbm %s1453_s0, 8192 }
  0x10   : > { %p1082_p10 = scmp.ne.s32.totalorder %s1212_s27, %s1081_s5  ;;  %p1083_p11 = pneg %p1216_p8 }
  0x11   : > { %p1087_p0 = scmp.lt.s32.totalorder %s1212_s27, %s1453_s0  ;;  %p1088_p1 = scmp.lt.s32.totalorder %s1086_s8, %s1081_s5 }
  0x12   : > { %p1084_p12 = pnand %p1083_p11, %p1082_p10 }
  0x13   : > { %p1089_p2 = por %p1088_p1, %p1087_p0 }
  0x14   : > { %p1085_p13 = pneg %p1084_p12 }
  0x16   : > { %p1090_p3 = pnand %p1089_p2, %p1085_p13 }
  0x18   : > { %1093 = shalt.err (!%p1090_p3)
}
  0x19   : > { %s1094_s11 = scalar_lea.vmem %s1214_s29, 4096  ;;  %s1145_s12 = smov [#allocation2]  }
  0x1a   : > { %p1095_p4 = scmp.ne.s32.totalorder %s1214_s29, %s1094_s11  ;;  %s1099_s18 = sshll.u32 %s1145_s12, 4  ;;  %s1100_s18 = int_to_ptr.vmem [resolvable:$false] %s1099_s18 }
  0x1b   : > { %s1101_s19 = scalar_lea.vmem %s1100_s18, 8192  ;;  %p1102_p10 = scmp.lt.s32.totalorder %s1214_s29, %s1100_s18 }
  0x1c   : > { %p1097_p5 = pnand %p1095_p4, %p1083_p11  ;;  %p1103_p12 = scmp.lt.s32.totalorder %s1101_s19, %s1094_s11 }
  0x1e   : > { %p1098_p6 = pneg %p1097_p5  ;;  %p1104_p9 = por %p1103_p12, %p1102_p10 }
  0x20   : > { %p1105_p7 = pnand %p1104_p9, %p1098_p6 }
  0x22   : > { %1108 = shalt.err (!%p1105_p7)
}
  0x23   : > { %s1146_s22 = smov 128   ;;  %s1147_s23 = smov 8  }
  0x24   : > { %981 = dma.hbm_to_vmem [thread:$0]  (!%p1216_p8), %s1212_s27, 4096, %s1214_s29, %s1221_s4, %s1146_s22, %s1146_s22, %s1147_s23  }
  0x25   : > { %p154_p11 = scmp.lt.s32.totalorder %s1143_s15, 3  ;;  %p1460_p13 = scmp.ge.s32.totalorder %s1143_s15, 1 }
  0x27   : > { %p155_p0 = pnand %p1460_p13, %p154_p11 }
  0x28   : > { %s160_s24 = sand.u32 (!%p155_p0), 1, %s1135_s13   ;;  %p1461_p7 = scmp.ne.s32.totalorder (!%p155_p0), %s1458_s21, 0 }
  0x29   : > { %158 = sbr.rel (%p155_p0) target bundleno = 340 (0x154), region = 32  ;;  %s792_s25 = sshll.u32 (!%p155_p0), %s160_s24, 8 }
  0x2a   : > { %s161_s26 = scalar_lea.sflag (!%p155_p0), [#allocation3], %s160_s24  ;;  %s1246_s28 = scalar_lea.vmem (!%p155_p0), [#allocation2], %s792_s25 }
  0x2e   : > { %1126 = dma.done.wait (%p1461_p7), %s161_s26, 4096  }
  0x2f   : > { %1128 = vsyncadd (%p1461_p7), %s161_s26, 4294963200  ;;  %v1017_v0 = vld [vmem:[%s1454_s1 + $0x78] sm:$0xff]   ;;  %v1019_v2 = vld [vmem:[%s1454_s1 + $0x70] sm:$0xff]   ;;  %s793_s12 = sshll.u32 %s783_s16, 5  ;;  %vm683_vm0 = vcmask 261120  }
  0x30   : > { %v1018_v1 = vld [vmem:[%s1454_s1 + $0x38] sm:$0xff]   ;;  %848 = vmatprep.subr.bf16.mxu0 %v1017_v0  ;;  %960 = vmatprep.subr.bf16.mxu1 %v1017_v0  ;;  %v1020_v3 = vld [vmem:[%s1454_s1 + $0x30] sm:$0xff]   ;;  %v1021_v4 = vld [vmem:[%s1454_s1 + $0x68] sm:$0xff]   ;;  %p189_p8 = scmp.lt.s32.totalorder %s793_s12, 63 }
  0x31   : > { %849 = vmatpush3.bf16.msra.mxu0 %v1018_v1  ;;  %968 = vmatpush3.bf16.msra.mxu1 %v1018_v1  ;;  %v1022_v5 = vld [vmem:[%s1454_s1 + $0x28] sm:$0xff]   ;;  %v1023_v6 = vld [vmem:[%s1454_s1 + $0x60] sm:$0xff]   ;;  %v1025_v8 = vld [vmem:[%s1454_s1 + $0x58] sm:$0xff]  }
  0x32   : > { %850 = vmatprep.subr.bf16.mxu0 %v1019_v2  ;;  %961 = vmatprep.subr.bf16.mxu1 %v1019_v2  ;;  %v1024_v7 = vld [vmem:[%s1454_s1 + $0x20] sm:$0xff]   ;;  %v1026_v9 = vld [vmem:[%s1454_s1 + $0x18] sm:$0xff]   ;;  %v1027_v10 = vld [vmem:[%s1454_s1 + $0x50] sm:$0xff]   ;;  %s1467_s12 = smov (!%p189_p8, %s793_s12), 63 }
  0x33   : > { %v1035_v11 = vld [vmem:[%s1246_s28 + $0x4] ss:$8 sps:$4 sm:$0xff]   ;;  %v1028_v13 = vld [vmem:[%s1454_s1 + $0x10] sm:$0xff]   ;;  %v1033_v18 = vld [vmem:[%s1246_s28] ss:$8 sps:$4 sm:$0xff]   ;;  %s794_s18 = sshll.u32 %s1467_s12, 3 }
  0x34   : > { %v1038_v12 = vld [vmem:[%s1246_s28 + $0x84] ss:$8 sps:$4 sm:$0xff]   ;;  %554 = vmatprep.mubr.bf16.mxu0 %v1035_v11  ;;  %v1036_v19 = vld [vmem:[%s1246_s28 + $0x80] ss:$8 sps:$4 sm:$0xff]   ;;  %v1039_v20 = vld [vmem:[%s1246_s28 + $0x14] ss:$8 sps:$4 sm:$0xff]   ;;  %s1342_s24 = scalar_lea.vmem %s1456_s3, %s794_s18 }
  0x35   : > { %851 = vmatpush3.bf16.msra.mxu0 %v1020_v3  ;;  %969 = vmatpush3.bf16.msra.mxu1 %v1020_v3  ;;  %v1029_v14 = vld [vmem:[%s1454_s1 + $0x48] sm:$0xff]   ;;  %v1031_v16 = vld [vmem:[%s1454_s1 + $0x40] sm:$0xff]   ;;  %v1041_v21 = vld [vmem:[%s1246_s28 + $0x94] ss:$8 sps:$4 sm:$0xff]  }
  0x36   : > { %852 = vmatprep.subr.bf16.mxu0 %v1021_v4  ;;  %962 = vmatprep.subr.bf16.mxu1 %v1021_v4  ;;  %v1030_v15 = vld [vmem:[%s1454_s1 + $0x8] sm:$0xff]   ;;  %v1032_v17 = vld [vmem:[%s1454_s1] sm:$0xff]   ;;  %v1043_v22 = vld [vmem:[%s1246_s28 + $0x10] ss:$8 sps:$4 sm:$0xff]  }
  0x37   : > { %618 = vmatprep.mubr.bf16.mxu1 %v1038_v12  ;;  %v1044_v23 = vld [vmem:[%s1246_s28 + $0x90] ss:$8 sps:$4 sm:$0xff]   ;;  %v1045_v24 = vld [vmem:[%s1246_s28 + $0x24] ss:$8 sps:$4 sm:$0xff]   ;;  %v1049_v26 = vld [vmem:[%s1246_s28 + $0x20] ss:$8 sps:$4 sm:$0xff]  }
  0x38   : > { %v1047_v25 = vld [vmem:[%s1246_s28 + $0xa4] ss:$8 sps:$4 sm:$0xff]   ;;  %v1050_v27 = vld [vmem:[%s1246_s28 + $0xa0] ss:$8 sps:$4 sm:$0xff]   ;;  %v1051_v28 = vld [vmem:[%s1246_s28 + $0x34] ss:$8 sps:$4 sm:$0xff]  }
  0x39   : > { %853 = vmatpush3.bf16.msra.mxu0 %v1022_v5  ;;  %970 = vmatpush3.bf16.msra.mxu1 %v1022_v5  ;;  %v1053_v29 = vld [vmem:[%s1246_s28 + $0xb4] ss:$8 sps:$4 sm:$0xff]   ;;  %v1055_v30 = vld [vmem:[%s1246_s28 + $0x30] ss:$8 sps:$4 sm:$0xff]   ;;  %v1057_v32 = vld [vmem:[%s1246_s28 + $0x44] ss:$8 sps:$4 sm:$0xff]  }
  0x3a   : > { %854 = vmatprep.subr.bf16.mxu0 %v1023_v6  ;;  %963 = vmatprep.subr.bf16.mxu1 %v1023_v6  ;;  %v1056_v31 = vld [vmem:[%s1246_s28 + $0xb0] ss:$8 sps:$4 sm:$0xff]   ;;  %v1059_v33 = vld [vmem:[%s1246_s28 + $0xc4] ss:$8 sps:$4 sm:$0xff]   ;;  %v1061_v34 = vld [vmem:[%s1246_s28 + $0x40] ss:$8 sps:$4 sm:$0xff]  }
  0x3b   : > { %v1062_v35 = vld [vmem:[%s1246_s28 + $0xc0] ss:$8 sps:$4 sm:$0xff]   ;;  %v1063_v36 = vld [vmem:[%s1246_s28 + $0x54] ss:$8 sps:$4 sm:$0xff]   ;;  %v1067_v38 = vld [vmem:[%s1246_s28 + $0x50] ss:$8 sps:$4 sm:$0xff]  }
  0x3c   : > { %v1065_v37 = vld [vmem:[%s1246_s28 + $0xd4] ss:$8 sps:$4 sm:$0xff]   ;;  %v1068_v39 = vld [vmem:[%s1246_s28 + $0xd0] ss:$8 sps:$4 sm:$0xff]   ;;  %v1069_v40 = vld [vmem:[%s1246_s28 + $0x64] ss:$8 sps:$4 sm:$0xff]  }
  0x3d   : > { %855 = vmatpush3.bf16.msra.mxu0 %v1024_v7  ;;  %971 = vmatpush3.bf16.msra.mxu1 %v1024_v7  ;;  %v1071_v41 = vld [vmem:[%s1246_s28 + $0xe4] ss:$8 sps:$4 sm:$0xff]   ;;  %v1073_v42 = vld [vmem:[%s1246_s28 + $0x60] ss:$8 sps:$4 sm:$0xff]   ;;  %v1075_v44 = vld [vmem:[%s1246_s28 + $0x74] ss:$8 sps:$4 sm:$0xff]  }
  0x3e   : > { %856 = vmatprep.subr.bf16.mxu0 %v1025_v8  ;;  %964 = vmatprep.subr.bf16.mxu1 %v1025_v8  ;;  %v1074_v43 = vld [vmem:[%s1246_s28 + $0xe0] ss:$8 sps:$4 sm:$0xff]   ;;  %v1077_v45 = vld [vmem:[%s1246_s28 + $0xf4] ss:$8 sps:$4 sm:$0xff]   ;;  %v1079_v46 = vld [vmem:[%s1246_s28 + $0x70] ss:$8 sps:$4 sm:$0xff]  }
  0x3f   : > { %v1080_v47 = vld [vmem:[%s1246_s28 + $0xf0] ss:$8 sps:$4 sm:$0xff]   ;;  %v1337_v50 = vld [vmem:[%s1455_s2] ss:$0 sm:$0xff] }
  0x41   : > { %857 = vmatpush3.bf16.msra.mxu0 %v1026_v9  ;;  %972 = vmatpush3.bf16.msra.mxu1 %v1026_v9 }
  0x42   : > { %858 = vmatprep.subr.bf16.mxu0 %v1027_v10  ;;  %965 = vmatprep.subr.bf16.mxu1 %v1027_v10 }
  0x45   : > { %859 = vmatpush3.bf16.msra.mxu0 %v1028_v13  ;;  %973 = vmatpush3.bf16.msra.mxu1 %v1028_v13 }
  0x46   : > { %860 = vmatprep.subr.bf16.mxu0 %v1029_v14  ;;  %966 = vmatprep.subr.bf16.mxu1 %v1029_v14 }
  0x49   : > { %861 = vmatpush3.bf16.msra.mxu0 %v1030_v15  ;;  %974 = vmatpush3.bf16.msra.mxu1 %v1030_v15 }
  0x4a   : > { %862 = vmatprep.subr.bf16.mxu0 %v1031_v16  ;;  %967 = vmatprep.subr.bf16.mxu1 %v1031_v16 }
  0x4d   : > { %863 = vmatpush3.bf16.msra.mxu0 %v1032_v17  ;;  %975 = vmatpush3.bf16.msra.mxu1 %v1032_v17 }
  0x50   : > { %555 = vmatmul.mubr.bf16.vlgmr.msra.gmra.mxu0 %v1033_v18  ;;  %619 = vmatmul.mubr.bf16.vlgmr.msra.gmra.mxu1 %v1036_v19 }
  0x51   : > { %562 = vmatprep.mubr.bf16.mxu0 %v1039_v20  ;;  %626 = vmatprep.mubr.bf16.mxu1 %v1041_v21 }
  0x58   : > { %563 = vmatmul.mubr.bf16.gmra.mxu0 %v1043_v22  ;;  %627 = vmatmul.mubr.bf16.gmra.mxu1 %v1044_v23 }
  0x59   : > { %570 = vmatprep.mubr.bf16.mxu0 %v1045_v24  ;;  %634 = vmatprep.mubr.bf16.mxu1 %v1047_v25 }
  0x60   : > { %571 = vmatmul.mubr.bf16.gmra.mxu0 %v1049_v26  ;;  %635 = vmatmul.mubr.bf16.gmra.mxu1 %v1050_v27 }
  0x61   : > { %578 = vmatprep.mubr.bf16.mxu0 %v1051_v28  ;;  %642 = vmatprep.mubr.bf16.mxu1 %v1053_v29 }
  0x68   : > { %579 = vmatmul.mubr.bf16.gmra.mxu0 %v1055_v30  ;;  %643 = vmatmul.mubr.bf16.gmra.mxu1 %v1056_v31 }
  0x69   : > { %586 = vmatprep.mubr.bf16.mxu0 %v1057_v32  ;;  %650 = vmatprep.mubr.bf16.mxu1 %v1059_v33 }
  0x70   : > { %587 = vmatmul.mubr.bf16.gmra.mxu0 %v1061_v34  ;;  %651 = vmatmul.mubr.bf16.gmra.mxu1 %v1062_v35 }
  0x71   : > { %594 = vmatprep.mubr.bf16.mxu0 %v1063_v36  ;;  %658 = vmatprep.mubr.bf16.mxu1 %v1065_v37 }
  0x78   : > { %595 = vmatmul.mubr.bf16.gmra.mxu0 %v1067_v38  ;;  %659 = vmatmul.mubr.bf16.gmra.mxu1 %v1068_v39 }
  0x79   : > { %602 = vmatprep.mubr.bf16.mxu0 %v1069_v40  ;;  %666 = vmatprep.mubr.bf16.mxu1 %v1071_v41 }
  0x80   : > { %603 = vmatmul.mubr.bf16.gmra.mxu0 %v1073_v42  ;;  %667 = vmatmul.mubr.bf16.gmra.mxu1 %v1074_v43 }
  0x81   : > { %610 = vmatprep.mubr.bf16.mxu0 %v1075_v44  ;;  %674 = vmatprep.mubr.bf16.mxu1 %v1077_v45 }
  0x88   : > { %611 = vmatmul.mubr.bf16.gmra.mxu0 %v1079_v46  ;;  %675 = vmatmul.mubr.bf16.gmra.mxu1 %v1080_v47 }
 0x110   : > { %v864_v48 = vpop.f32.mrf.mxu0  ;;  %v912_v49 = vpop.f32.mrf.mxu1 }
 0x112   : > { %v865_v51 = vpop.f32.mrf.mxu0  ;;  %v913_v52 = vpop.f32.mrf.mxu1 }
 0x113   : > { %v866_v53 = vadd.f32 %v865_v51, %v864_v48  ;;  %v914_v54 = vadd.f32 %v913_v52, %v912_v49 }
 0x114   : > { %v867_v55 = vpop.f32.mrf.mxu0  ;;  %v915_v56 = vpop.f32.mrf.mxu1 }
 0x115   : > { %v557_v57 = vadd.f32 %v866_v53, %v1337_v50  ;;  %v621_v58 = vadd.f32 %v914_v54, %v1337_v50 }
 0x116   : > { %v868_v59 = vpop.f32.mrf.mxu0  ;;  %v916_v60 = vpop.f32.mrf.mxu1 }
 0x117   : > { %684 = vst.msk [vmem:[%s1342_s24] sm:$0xff] %vm683_vm0, %v557_v57  ;;  %700 = vst.msk [vmem:[%s1342_s24 + $0x80] sm:$0xff] %vm683_vm0, %v621_v58  ;;  %v869_v61 = vadd.f32 %v868_v59, %v867_v55  ;;  %v917_v62 = vadd.f32 %v916_v60, %v915_v56 }
 0x118   : > { %v870_v63 = vpop.f32.mrf.mxu0  ;;  %v918_v0 = vpop.f32.mrf.mxu1 }
 0x119   : > { %v560_v1 = vadd.f32 %v869_v61, %v1337_v50  ;;  %v624_v2 = vadd.f32 %v917_v62, %v1337_v50 }
 0x11a   : > { %v871_v3 = vpop.f32.mrf.mxu0  ;;  %v919_v4 = vpop.f32.mrf.mxu1 }
 0x11b   : > { %685 = vst.msk [vmem:[%s1342_s24 + $0x8] sm:$0xff] %vm683_vm0, %v560_v1  ;;  %701 = vst.msk [vmem:[%s1342_s24 + $0x88] sm:$0xff] %vm683_vm0, %v624_v2  ;;  %v872_v5 = vadd.f32 %v871_v3, %v870_v63  ;;  %v920_v6 = vadd.f32 %v919_v4, %v918_v0 }
 0x11c   : > { %v873_v7 = vpop.f32.mrf.mxu0  ;;  %v921_v8 = vpop.f32.mrf.mxu1 }
 0x11d   : > { %v565_v9 = vadd.f32 %v872_v5, %v1337_v50  ;;  %v629_v10 = vadd.f32 %v920_v6, %v1337_v50 }
 0x11e   : > { %v874_v11 = vpop.f32.mrf.mxu0  ;;  %v922_v12 = vpop.f32.mrf.mxu1 }
 0x11f   : > { %686 = vst.msk [vmem:[%s1342_s24 + $0x10] sm:$0xff] %vm683_vm0, %v565_v9  ;;  %702 = vst.msk [vmem:[%s1342_s24 + $0x90] sm:$0xff] %vm683_vm0, %v629_v10  ;;  %v875_v13 = vadd.f32 %v874_v11, %v873_v7  ;;  %v923_v14 = vadd.f32 %v922_v12, %v921_v8 }
 0x120   : > { %v876_v15 = vpop.f32.mrf.mxu0  ;;  %v924_v16 = vpop.f32.mrf.mxu1 }
 0x121   : > { %v568_v17 = vadd.f32 %v875_v13, %v1337_v50  ;;  %v632_v18 = vadd.f32 %v923_v14, %v1337_v50 }
 0x122   : > { %v877_v19 = vpop.f32.mrf.mxu0  ;;  %v925_v20 = vpop.f32.mrf.mxu1 }
 0x123   : > { %687 = vst.msk [vmem:[%s1342_s24 + $0x18] sm:$0xff] %vm683_vm0, %v568_v17  ;;  %703 = vst.msk [vmem:[%s1342_s24 + $0x98] sm:$0xff] %vm683_vm0, %v632_v18  ;;  %v878_v21 = vadd.f32 %v877_v19, %v876_v15  ;;  %v926_v22 = vadd.f32 %v925_v20, %v924_v16 }
 0x124   : > { %v879_v23 = vpop.f32.mrf.mxu0  ;;  %v927_v24 = vpop.f32.mrf.mxu1 }
 0x125   : > { %v573_v25 = vadd.f32 %v878_v21, %v1337_v50  ;;  %v637_v26 = vadd.f32 %v926_v22, %v1337_v50 }
 0x126   : > { %v880_v27 = vpop.f32.mrf.mxu0  ;;  %v928_v28 = vpop.f32.mrf.mxu1 }
 0x127   : > { %688 = vst.msk [vmem:[%s1342_s24 + $0x20] sm:$0xff] %vm683_vm0, %v573_v25  ;;  %704 = vst.msk [vmem:[%s1342_s24 + $0xa0] sm:$0xff] %vm683_vm0, %v637_v26  ;;  %v881_v29 = vadd.f32 %v880_v27, %v879_v23  ;;  %v929_v30 = vadd.f32 %v928_v28, %v927_v24 }
 0x128   : > { %v882_v31 = vpop.f32.mrf.mxu0  ;;  %v930_v32 = vpop.f32.mrf.mxu1 }
 0x129   : > { %v576_v33 = vadd.f32 %v881_v29, %v1337_v50  ;;  %v640_v34 = vadd.f32 %v929_v30, %v1337_v50 }
 0x12a   : > { %v883_v35 = vpop.f32.mrf.mxu0  ;;  %v931_v36 = vpop.f32.mrf.mxu1 }
 0x12b   : > { %689 = vst.msk [vmem:[%s1342_s24 + $0x28] sm:$0xff] %vm683_vm0, %v576_v33  ;;  %705 = vst.msk [vmem:[%s1342_s24 + $0xa8] sm:$0xff] %vm683_vm0, %v640_v34  ;;  %v884_v37 = vadd.f32 %v883_v35, %v882_v31  ;;  %v932_v38 = vadd.f32 %v931_v36, %v930_v32 }
 0x12c   : > { %v885_v39 = vpop.f32.mrf.mxu0  ;;  %v933_v40 = vpop.f32.mrf.mxu1 }
 0x12d   : > { %v581_v41 = vadd.f32 %v884_v37, %v1337_v50  ;;  %v645_v42 = vadd.f32 %v932_v38, %v1337_v50 }
 0x12e   : > { %v886_v43 = vpop.f32.mrf.mxu0  ;;  %v934_v44 = vpop.f32.mrf.mxu1 }
 0x12f   : > { %690 = vst.msk [vmem:[%s1342_s24 + $0x30] sm:$0xff] %vm683_vm0, %v581_v41  ;;  %706 = vst.msk [vmem:[%s1342_s24 + $0xb0] sm:$0xff] %vm683_vm0, %v645_v42  ;;  %v887_v45 = vadd.f32 %v886_v43, %v885_v39  ;;  %v935_v46 = vadd.f32 %v934_v44, %v933_v40 }
 0x130   : > { %v888_v47 = vpop.f32.mrf.mxu0  ;;  %v936_v48 = vpop.f32.mrf.mxu1 }
 0x131   : > { %v584_v49 = vadd.f32 %v887_v45, %v1337_v50  ;;  %v648_v51 = vadd.f32 %v935_v46, %v1337_v50 }
 0x132   : > { %v889_v52 = vpop.f32.mrf.mxu0  ;;  %v937_v53 = vpop.f32.mrf.mxu1 }
 0x133   : > { %691 = vst.msk [vmem:[%s1342_s24 + $0x38] sm:$0xff] %vm683_vm0, %v584_v49  ;;  %707 = vst.msk [vmem:[%s1342_s24 + $0xb8] sm:$0xff] %vm683_vm0, %v648_v51  ;;  %v890_v54 = vadd.f32 %v889_v52, %v888_v47  ;;  %v938_v55 = vadd.f32 %v937_v53, %v936_v48 }
 0x134   : > { %v891_v56 = vpop.f32.mrf.mxu0  ;;  %v939_v57 = vpop.f32.mrf.mxu1 }
 0x135   : > { %v589_v58 = vadd.f32 %v890_v54, %v1337_v50  ;;  %v653_v59 = vadd.f32 %v938_v55, %v1337_v50 }
 0x136   : > { %v892_v60 = vpop.f32.mrf.mxu0  ;;  %v940_v61 = vpop.f32.mrf.mxu1 }
 0x137   : > { %692 = vst.msk [vmem:[%s1342_s24 + $0x40] sm:$0xff] %vm683_vm0, %v589_v58  ;;  %708 = vst.msk [vmem:[%s1342_s24 + $0xc0] sm:$0xff] %vm683_vm0, %v653_v59  ;;  %v893_v62 = vadd.f32 %v892_v60, %v891_v56  ;;  %v941_v63 = vadd.f32 %v940_v61, %v939_v57 }
 0x138   : > { %v894_v0 = vpop.f32.mrf.mxu0  ;;  %v942_v1 = vpop.f32.mrf.mxu1 }
 0x139   : > { %v592_v2 = vadd.f32 %v893_v62, %v1337_v50  ;;  %v656_v3 = vadd.f32 %v941_v63, %v1337_v50 }
 0x13a   : > { %v895_v4 = vpop.f32.mrf.mxu0  ;;  %v943_v5 = vpop.f32.mrf.mxu1 }
 0x13b   : > { %693 = vst.msk [vmem:[%s1342_s24 + $0x48] sm:$0xff] %vm683_vm0, %v592_v2  ;;  %709 = vst.msk [vmem:[%s1342_s24 + $0xc8] sm:$0xff] %vm683_vm0, %v656_v3  ;;  %v896_v6 = vadd.f32 %v895_v4, %v894_v0  ;;  %v944_v7 = vadd.f32 %v943_v5, %v942_v1 }
 0x13c   : > { %v897_v8 = vpop.f32.mrf.mxu0  ;;  %v945_v9 = vpop.f32.mrf.mxu1 }
 0x13d   : > { %v597_v10 = vadd.f32 %v896_v6, %v1337_v50  ;;  %v661_v11 = vadd.f32 %v944_v7, %v1337_v50 }
 0x13e   : > { %v898_v12 = vpop.f32.mrf.mxu0  ;;  %v946_v13 = vpop.f32.mrf.mxu1 }
 0x13f   : > { %694 = vst.msk [vmem:[%s1342_s24 + $0x50] sm:$0xff] %vm683_vm0, %v597_v10  ;;  %710 = vst.msk [vmem:[%s1342_s24 + $0xd0] sm:$0xff] %vm683_vm0, %v661_v11  ;;  %v899_v14 = vadd.f32 %v898_v12, %v897_v8  ;;  %v947_v15 = vadd.f32 %v946_v13, %v945_v9 }
 0x140   : > { %v900_v16 = vpop.f32.mrf.mxu0  ;;  %v948_v17 = vpop.f32.mrf.mxu1 }
 0x141   : > { %v600_v18 = vadd.f32 %v899_v14, %v1337_v50  ;;  %v664_v19 = vadd.f32 %v947_v15, %v1337_v50 }
 0x142   : > { %v901_v20 = vpop.f32.mrf.mxu0  ;;  %v949_v21 = vpop.f32.mrf.mxu1 }
 0x143   : > { %695 = vst.msk [vmem:[%s1342_s24 + $0x58] sm:$0xff] %vm683_vm0, %v600_v18  ;;  %711 = vst.msk [vmem:[%s1342_s24 + $0xd8] sm:$0xff] %vm683_vm0, %v664_v19  ;;  %v902_v22 = vadd.f32 %v901_v20, %v900_v16  ;;  %v950_v23 = vadd.f32 %v949_v21, %v948_v17 }
 0x144   : > { %v903_v24 = vpop.f32.mrf.mxu0  ;;  %v951_v25 = vpop.f32.mrf.mxu1 }
 0x145   : > { %v605_v26 = vadd.f32 %v902_v22, %v1337_v50  ;;  %v669_v27 = vadd.f32 %v950_v23, %v1337_v50 }
 0x146   : > { %v904_v28 = vpop.f32.mrf.mxu0  ;;  %v952_v29 = vpop.f32.mrf.mxu1 }
 0x147   : > { %696 = vst.msk [vmem:[%s1342_s24 + $0x60] sm:$0xff] %vm683_vm0, %v605_v26  ;;  %712 = vst.msk [vmem:[%s1342_s24 + $0xe0] sm:$0xff] %vm683_vm0, %v669_v27  ;;  %v905_v30 = vadd.f32 %v904_v28, %v903_v24  ;;  %v953_v31 = vadd.f32 %v952_v29, %v951_v25 }
 0x148   : > { %v906_v32 = vpop.f32.mrf.mxu0  ;;  %v954_v33 = vpop.f32.mrf.mxu1 }
 0x149   : > { %v608_v34 = vadd.f32 %v905_v30, %v1337_v50  ;;  %v672_v35 = vadd.f32 %v953_v31, %v1337_v50 }
 0x14a   : > { %v907_v36 = vpop.f32.mrf.mxu0  ;;  %v955_v37 = vpop.f32.mrf.mxu1 }
 0x14b   : > { %697 = vst.msk [vmem:[%s1342_s24 + $0x68] sm:$0xff] %vm683_vm0, %v608_v34  ;;  %713 = vst.msk [vmem:[%s1342_s24 + $0xe8] sm:$0xff] %vm683_vm0, %v672_v35  ;;  %v908_v38 = vadd.f32 %v907_v36, %v906_v32  ;;  %v956_v39 = vadd.f32 %v955_v37, %v954_v33 }
 0x14c   : > { %v909_v40 = vpop.f32.mrf.mxu0  ;;  %v957_v41 = vpop.f32.mrf.mxu1 }
 0x14d   : > { %v613_v42 = vadd.f32 %v908_v38, %v1337_v50  ;;  %v677_v43 = vadd.f32 %v956_v39, %v1337_v50 }
 0x14e   : > { %v910_v44 = vpop.f32.mrf.mxu0  ;;  %v958_v45 = vpop.f32.mrf.mxu1 }
 0x14f   : > { %698 = vst.msk [vmem:[%s1342_s24 + $0x70] sm:$0xff] %vm683_vm0, %v613_v42  ;;  %714 = vst.msk [vmem:[%s1342_s24 + $0xf0] sm:$0xff] %vm683_vm0, %v677_v43  ;;  %v911_v46 = vadd.f32 %v910_v44, %v909_v40  ;;  %v959_v47 = vadd.f32 %v958_v45, %v957_v41 }
 0x151   : > { %v616_v48 = vadd.f32 %v911_v46, %v1337_v50  ;;  %v680_v49 = vadd.f32 %v959_v47, %v1337_v50 }
 0x153   : > { %699 = vst.msk [vmem:[%s1342_s24 + $0x78] sm:$0xff] %vm683_vm0, %v616_v48  ;;  %715 = vst.msk [vmem:[%s1342_s24 + $0xf8] sm:$0xff] %vm683_vm0, %v680_v49 }
 0x154 PF: > { %p13_p9 = scmp.ge.s32.totalorder %s1188_s17, 4   ;;  %s1462_s12 = smov %s1135_s13 }
 0x155   : > { %s1463_s13 = smov %s1139_s14  ;;  %s1464_s14 = smov %s1198_s20 }
 0x156   : > { %s1465_s15 = smov %s1188_s17  ;;  %15 = sbr.rel (!%p13_p9) target bundleno = 3 (0x3), region = 72 }
 0x15b   :  { %738 = vsyncpa [#allocation3], 1 }
 0x15c   :  { %740 = vsyncpa [#allocation3 + $0x1], 1 }

</bundles_post_ra>
